<compile_context>
chip_gen: v7x
topology: tpu7x:2x2x1
jax: 0.10.0
libtpu: 0.0.40
codegen_flags: <defaults>
</compile_context>

<pallas_src>
import functools

import jax
import jax.numpy as jnp
from jax.experimental import pallas as pl
from jax.experimental.pallas import tpu as pltpu


def _ls_ce_kernel(logits_ref, label_ref, loss_ref, cnt_ref, ch_ref, *,
                  lb_pos, lb_neg, lb_ignore, hw, n_classes, nb_inner,
                  mask_tail):
    p = pl.program_id(1)          # HW-chunk (parallel) index
    j = pl.program_id(2)          # inner reduction index over HW blocks

    @pl.when(j == 0)
    def _():
        loss_ref[...] = jnp.zeros_like(loss_ref)
        cnt_ref[...] = jnp.zeros_like(cnt_ref)
        # class-index iota hoisted to VMEM scratch: generated once per
        # (batch, chunk) group instead of every grid step.
        ch_ref[...] = jax.lax.broadcasted_iota(jnp.int32, ch_ref.shape, 1)

    x = logits_ref[...].astype(jnp.float32)            # (1, C, T)
    lbl = label_ref[...].astype(jnp.int32)              # (1, 1, T)
    _, _, T = x.shape

    if mask_tail:
        # Only compiled in when the HW blocks don't exactly cover HW.
        jb = p * nb_inner + j                            # global HW-block index
        col = jb * T + jax.lax.broadcasted_iota(jnp.int32, (1, 1, T), 2)
        in_bounds = col < hw
        valid = jnp.logical_and(in_bounds, lbl != lb_ignore)
        x = jnp.where(in_bounds, x, 0.0)                 # neutralize OOB garbage
    else:
        valid = lbl != lb_ignore

    # numerically-stable log-softmax pieces over the class (sublane) axis
    m = jnp.max(x, axis=1, keepdims=True)                # (1, 1, T)
    z = x - m
    lse = jnp.log(jnp.sum(jnp.exp(z), axis=1, keepdims=True))

    # Single fused weighted class reduction:
    #   -sum_c(log_softmax * smooth) = smooth_sum*lse - sum_c(w_c * z)
    #   with w_c = lb_pos if c == label else lb_neg.
    lbl_safe = jnp.where(valid, lbl, 0)                  # garbage/ignored -> 0
    w = jnp.where(ch_ref[...] == lbl_safe, lb_pos, lb_neg)
    s = jnp.sum(w * z, axis=1, keepdims=True)            # (1, 1, T)

    smooth_sum = lb_pos + (n_classes - 1) * lb_neg
    row_loss = smooth_sum * lse - s

    loss_ref[...] += jnp.where(valid, row_loss, 0.0)
    cnt_ref[...] += valid.astype(jnp.float32)


def label_smooth_softmax_ce(logits, label, *, lb_pos=0.9, lb_neg=0.005,
                            lb_ignore=255, reduction="mean", tile_hw=None):
    """logits: (N, C, H, W); label: (N, H, W) int. Returns scalar loss.

    Reproduces LabelSmoothSoftmaxCE(use_focal_loss=False, weight=None).
    """
    # TODO(synk): use_focal_loss=True branch (FocalLoss2 + TripletLoss) and the
    # per-class `weight` option are not implemented.
    # TODO(synk): the full class axis must fit one block; no C-tiled /
    # online-softmax fallback for extremely large class counts.
    N, C, H, W = logits.shape
    HW = H * W

    # Free, contiguous reshapes — no transpose, no padding copy.
    x = logits.reshape(N, C, HW)
    y = label.reshape(N, 1, HW)
    # Stream the native integer label dtype; cast happens on the small
    # (1,1,T) block in-kernel (avoids a full HBM read+write label pass).
    if (not jnp.issubdtype(y.dtype, jnp.integer)) or y.dtype.itemsize > 4:
        y = y.astype(jnp.int32)

    # Lane-tile heuristic: size off the *padded* sublane count so the f32
    # compute footprint per block is ~4 MiB; amortizes the ~0.35us/step
    # overhead (important on v7x's 3.2 TB/s HBM) while staying well inside
    # the 48 MiB VMEM budget even with double buffering + scratch.
    c_pad_f32 = ((C + 7) // 8) * 8
    if HW < 128:
        tile = HW                                        # full-extent lane block
    else:
        if tile_hw is None:
            t = (4 << 20) // max(1, c_pad_f32 * 4)
            t = max(128, min(t, 65536))
        else:
            t = max(128, int(tile_hw))
        tile = max(128, min((t // 128) * 128, (HW // 128) * 128))
    nb = pl.cdiv(HW, tile)

    # Split the HW blocks across a second *parallel* axis so a 2-TensorCore
    # chip (v7x) is busy even at N == 1; harmless on single-core chips.
    P = 2 if nb >= 2 else 1
    nb_inner = pl.cdiv(nb, P)
    mask_tail = (P * nb_inner * tile) != HW

    kernel = functools.partial(
        _ls_ce_kernel,
        lb_pos=float(lb_pos), lb_neg=float(lb_neg), lb_ignore=int(lb_ignore),
        hw=int(HW), n_classes=int(C), nb_inner=int(nb_inner),
        mask_tail=bool(mask_tail),
    )

    if P * nb_inner == nb:
        def in_map(i, p, j):
            return (i, 0, p * nb_inner + j)
    else:
        # Odd block count: the last chunk's extra block re-reads the final
        # valid block; its columns are masked out in-kernel (col >= HW).
        def in_map(i, p, j):
            return (i, 0, jnp.minimum(p * nb_inner + j, nb - 1))

    out_map = lambda i, p, j: (i * P + p, 0, 0)

    loss_part, cnt_part = pl.pallas_call(
        kernel,
        out_shape=(
            jax.ShapeDtypeStruct((N * P, 1, tile), jnp.float32),  # loss partials
            jax.ShapeDtypeStruct((N * P, 1, tile), jnp.float32),  # valid counts
        ),
        grid_spec=pltpu.PrefetchScalarGridSpec(
            num_scalar_prefetch=0,
            grid=(N, P, nb_inner),
            in_specs=[
                pl.BlockSpec((1, C, tile), in_map),
                pl.BlockSpec((1, 1, tile), in_map),
            ],
            out_specs=[
                pl.BlockSpec((1, 1, tile), out_map),
                pl.BlockSpec((1, 1, tile), out_map),
            ],
            scratch_shapes=[pltpu.VMEM((1, C, tile), jnp.int32)],
        ),
        compiler_params=pltpu.CompilerParams(
            dimension_semantics=("parallel", "parallel", "arbitrary"),
            vmem_limit_bytes=48 * 1024 * 1024,
        ),
    )(x, y)

    sum_loss = jnp.sum(loss_part)
    n_valid = jnp.sum(cnt_part)
    if reduction == "mean":
        # NOTE: matches the reference — NaN/Inf if every pixel is ignored.
        return sum_loss / n_valid
    return sum_loss  # 'sum'


def _reference(logits, label, lb_pos=0.9, lb_neg=0.005, lb_ignore=255,
               reduction="mean"):
    # pure-JAX reference mirroring the PyTorch forward
    N, C, H, W = logits.shape
    logs = jax.nn.log_softmax(logits.astype(jnp.float32), axis=1)
    ignore = label == lb_ignore
    n_valid = jnp.sum(~ignore)
    lbl = jnp.where(ignore, 0, label)
    one_hot = jax.nn.one_hot(lbl, C, axis=1, dtype=jnp.float32)
    smooth = lb_pos * one_hot + lb_neg * (1.0 - one_hot)
    smooth = jnp.where(ignore[:, None, :, :], 0.0, smooth)
    sum_loss = -jnp.sum(logs * smooth)
    if reduction == "mean":
        return sum_loss / n_valid
    return sum_loss


if __name__ == "__main__":
    key = jax.random.PRNGKey(0)
    k1, k2, k3 = jax.random.split(key, 3)

    # primary small test (tile == HW, single block)
    N, C, H, W = 2, 4, 16, 16
    logits = jax.random.normal(k1, (N, C, H, W), dtype=jnp.float32)
    label = jax.random.randint(k2, (N, H, W), 0, C, dtype=jnp.int32)
    ignore_mask = jax.random.bernoulli(k3, 0.1, (N, H, W))
    label = jnp.where(ignore_mask, 255, label)

    loss_mean = jax.block_until_ready(
        label_smooth_softmax_ce(logits, label, reduction="mean"))
    loss_sum = jax.block_until_ready(
        label_smooth_softmax_ce(logits, label, reduction="sum"))
    ref_mean = _reference(logits, label, reduction="mean")
    ref_sum = _reference(logits, label, reduction="sum")
    assert jnp.allclose(loss_mean, ref_mean, rtol=1e-5, atol=1e-5), (loss_mean, ref_mean)
    assert jnp.allclose(loss_sum, ref_sum, rtol=1e-5, atol=1e-4), (loss_sum, ref_sum)

    # tail + 2-way HW split path (HW = 320 -> tile 256, nb 2, P 2, masked tail)
    k4, k5, k6 = jax.random.split(jax.random.PRNGKey(1), 3)
    H2, W2 = 16, 20
    logits2 = jax.random.normal(k4, (N, C, H2, W2), dtype=jnp.float32)
    label2 = jax.random.randint(k5, (N, H2, W2), 0, C, dtype=jnp.int32)
    label2 = jnp.where(jax.random.bernoulli(k6, 0.1, (N, H2, W2)), 255, label2)
    out2 = jax.block_until_ready(
        label_smooth_softmax_ce(logits2, label2, reduction="mean"))
    ref2 = _reference(logits2, label2, reduction="mean")
    assert jnp.allclose(out2, ref2, rtol=1e-5, atol=1e-5), (out2, ref2)

    # odd block count -> clamped duplicate block path (HW=384, tile_hw=128, nb=3)
    out3 = jax.block_until_ready(
        label_smooth_softmax_ce(
            jax.random.normal(jax.random.PRNGKey(2), (N, C, 16, 24), jnp.float32),
            jnp.zeros((N, 16, 24), jnp.int32),
            reduction="mean", tile_hw=128))
    ref3 = _reference(
        jax.random.normal(jax.random.PRNGKey(2), (N, C, 16, 24), jnp.float32),
        jnp.zeros((N, 16, 24), jnp.int32), reduction="mean")
    assert jnp.allclose(out3, ref3, rtol=1e-5, atol=1e-5), (out3, ref3)

    print("KERNEL_OK")
</pallas_src>

<mosaic_0001>
module attributes {stable_mosaic.version = 11 : i64} {
  func.func @_ls_ce_kernel(%arg0: i32, %arg1: i32, %arg2: i32, %arg3: memref<1x4x256xf32, #tpu.memory_space<vmem>>, %arg4: memref<1x1x256xi32, #tpu.memory_space<vmem>>, %arg5: memref<1x1x256xf32, #tpu.memory_space<vmem>>, %arg6: memref<1x1x256xf32, #tpu.memory_space<vmem>>, %arg7: memref<1x4x256xi32, #tpu.memory_space<vmem>>) attributes {dimension_semantics = [#tpu.dimension_semantics<parallel>, #tpu.dimension_semantics<parallel>, #tpu.dimension_semantics<arbitrary>], iteration_bounds = array<i64: 2, 1, 1>, scalar_prefetch = 0 : i64, scratch_operands = 1 : i64, tpu.core_type = #tpu.core_type<tc>, window_params = [{transform_indices = @transform_0, window_bounds = array<i64: 1, 4, 256>}, {transform_indices = @transform_1, window_bounds = array<i64: 1, 1, 256>}, {transform_indices = @transform_2, window_bounds = array<i64: 1, 1, 256>}, {transform_indices = @transform_3, window_bounds = array<i64: 1, 1, 256>}]} {
    %c0_i32 = arith.constant 0 : i32
    %0 = arith.cmpi eq, %arg2, %c0_i32 : i32
    %1 = arith.extui %0 : i1 to i32
    %c0_i32_0 = arith.constant 0 : i32
    %2 = arith.cmpi ne, %1, %c0_i32_0 : i32
    scf.if %2 {
      %cst_28 = arith.constant 0.000000e+00 : f32
      %39 = vector.broadcast %cst_28 : f32 to vector<1x1x256xf32>
      %c0_29 = arith.constant 0 : index
      %c0_30 = arith.constant 0 : index
      %c0_31 = arith.constant 0 : index
      %40 = vector.load %arg5[%c0_29, %c0_30, %c0_31] : memref<1x1x256xf32, #tpu.memory_space<vmem>>, vector<1x1x256xf32>
      tpu.vector_store %arg5[%c0_29, %c0_30, %c0_31], %39 {strides = array<i32>} : memref<1x1x256xf32, #tpu.memory_space<vmem>>, vector<1x1x256xf32>,
      %cst_32 = arith.constant 0.000000e+00 : f32
      %41 = vector.broadcast %cst_32 : f32 to vector<1x1x256xf32>
      %c0_33 = arith.constant 0 : index
      %c0_34 = arith.constant 0 : index
      %c0_35 = arith.constant 0 : index
      %42 = vector.load %arg6[%c0_33, %c0_34, %c0_35] : memref<1x1x256xf32, #tpu.memory_space<vmem>>, vector<1x1x256xf32>
      tpu.vector_store %arg6[%c0_33, %c0_34, %c0_35], %41 {strides = array<i32>} : memref<1x1x256xf32, #tpu.memory_space<vmem>>, vector<1x1x256xf32>,
      %43 = tpu.iota {dimensions = array<i32: 1>} : vector<1x4x256xi32>
      %c0_36 = arith.constant 0 : index
      %c0_37 = arith.constant 0 : index
      %c0_38 = arith.constant 0 : index
      %44 = vector.load %arg7[%c0_36, %c0_37, %c0_38] : memref<1x4x256xi32, #tpu.memory_space<vmem>>, vector<1x4x256xi32>
      tpu.vector_store %arg7[%c0_36, %c0_37, %c0_38], %43 {strides = array<i32>} : memref<1x4x256xi32, #tpu.memory_space<vmem>>, vector<1x4x256xi32>,
    } else {
    }
    %c0 = arith.constant 0 : index
    %c0_1 = arith.constant 0 : index
    %c0_2 = arith.constant 0 : index
    %3 = vector.load %arg3[%c0, %c0_1, %c0_2] : memref<1x4x256xf32, #tpu.memory_space<vmem>>, vector<1x4x256xf32>
    %c0_3 = arith.constant 0 : index
    %c0_4 = arith.constant 0 : index
    %c0_5 = arith.constant 0 : index
    %4 = vector.load %arg4[%c0_3, %c0_4, %c0_5] : memref<1x1x256xi32, #tpu.memory_space<vmem>>, vector<1x1x256xi32>
    %c255_i32 = arith.constant 255 : i32
    %5 = vector.broadcast %c255_i32 : i32 to vector<1x1x256xi32>
    %6 = arith.cmpi ne, %4, %5 : vector<1x1x256xi32>
    %cst = arith.constant dense<0xFF800000> : vector<1x256xf32>
    %7 = vector.multi_reduction <maximumf>, %3, %cst [1] : vector<1x4x256xf32> to vector<1x256xf32>
    %8 = vector.shape_cast %7 : vector<1x256xf32> to vector<1x1x256xf32>
    %9 = vector.broadcast %8 : vector<1x1x256xf32> to vector<1x4x256xf32>
    %10 = arith.subf %3, %9 : vector<1x4x256xf32>
    %11 = math.exp %10 : vector<1x4x256xf32>
    %cst_6 = arith.constant dense<0.000000e+00> : vector<1x256xf32>
    %12 = vector.multi_reduction <add>, %11, %cst_6 [1] : vector<1x4x256xf32> to vector<1x256xf32>
    %13 = vector.shape_cast %12 : vector<1x256xf32> to vector<1x1x256xf32>
    %14 = math.log %13 : vector<1x1x256xf32>
    %c0_i32_7 = arith.constant 0 : i32
    %15 = vector.broadcast %c0_i32_7 : i32 to vector<1x1x256xi32>
    %16 = arith.select %6, %4, %15 : vector<1x1x256xi1>, vector<1x1x256xi32>
    %c0_8 = arith.constant 0 : index
    %c0_9 = arith.constant 0 : index
    %c0_10 = arith.constant 0 : index
    %17 = vector.load %arg7[%c0_8, %c0_9, %c0_10] : memref<1x4x256xi32, #tpu.memory_space<vmem>>, vector<1x4x256xi32>
    %18 = vector.broadcast %16 : vector<1x1x256xi32> to vector<1x4x256xi32>
    %19 = arith.cmpi eq, %17, %18 : vector<1x4x256xi32>
    %cst_11 = arith.constant 0.899999976 : f32
    %cst_12 = arith.constant 5.000000e-03 : f32
    %20 = vector.broadcast %cst_11 : f32 to vector<1x4x256xf32>
    %21 = vector.broadcast %cst_12 : f32 to vector<1x4x256xf32>
    %22 = arith.select %19, %20, %21 : vector<1x4x256xi1>, vector<1x4x256xf32>
    %23 = arith.mulf %22, %10 : vector<1x4x256xf32>
    %cst_13 = arith.constant dense<0.000000e+00> : vector<1x256xf32>
    %24 = vector.multi_reduction <add>, %23, %cst_13 [1] : vector<1x4x256xf32> to vector<1x256xf32>
    %25 = vector.shape_cast %24 : vector<1x256xf32> to vector<1x1x256xf32>
    %cst_14 = arith.constant 9.150000e-01 : f32
    %26 = vector.broadcast %cst_14 : f32 to vector<1x1x256xf32>
    %27 = arith.mulf %26, %14 : vector<1x1x256xf32>
    %28 = arith.subf %27, %25 : vector<1x1x256xf32>
    %c0_15 = arith.constant 0 : index
    %c0_16 = arith.constant 0 : index
    %c0_17 = arith.constant 0 : index
    %29 = vector.load %arg5[%c0_15, %c0_16, %c0_17] : memref<1x1x256xf32, #tpu.memory_space<vmem>>, vector<1x1x256xf32>
    %cst_18 = arith.constant 0.000000e+00 : f32
    %30 = vector.broadcast %cst_18 : f32 to vector<1x1x256xf32>
    %31 = arith.select %6, %28, %30 : vector<1x1x256xi1>, vector<1x1x256xf32>
    %32 = arith.addf %29, %31 : vector<1x1x256xf32>
    %c0_19 = arith.constant 0 : index
    %c0_20 = arith.constant 0 : index
    %c0_21 = arith.constant 0 : index
    %33 = vector.load %arg5[%c0_19, %c0_20, %c0_21] : memref<1x1x256xf32, #tpu.memory_space<vmem>>, vector<1x1x256xf32>
    tpu.vector_store %arg5[%c0_19, %c0_20, %c0_21], %32 {strides = array<i32>} : memref<1x1x256xf32, #tpu.memory_space<vmem>>, vector<1x1x256xf32>,
    %c0_22 = arith.constant 0 : index
    %c0_23 = arith.constant 0 : index
    %c0_24 = arith.constant 0 : index
    %34 = vector.load %arg6[%c0_22, %c0_23, %c0_24] : memref<1x1x256xf32, #tpu.memory_space<vmem>>, vector<1x1x256xf32>
    %35 = arith.extui %6 : vector<1x1x256xi1> to vector<1x1x256xi32>
    %36 = arith.sitofp %35 : vector<1x1x256xi32> to vector<1x1x256xf32>
    %37 = arith.addf %34, %36 : vector<1x1x256xf32>
    %c0_25 = arith.constant 0 : index
    %c0_26 = arith.constant 0 : index
    %c0_27 = arith.constant 0 : index
    %38 = vector.load %arg6[%c0_25, %c0_26, %c0_27] : memref<1x1x256xf32, #tpu.memory_space<vmem>>, vector<1x1x256xf32>
    tpu.vector_store %arg6[%c0_25, %c0_26, %c0_27], %37 {strides = array<i32>} : memref<1x1x256xf32, #tpu.memory_space<vmem>>, vector<1x1x256xf32>,
    return
  }
  func.func @transform_0(%arg0: i32, %arg1: i32, %arg2: i32) -> (i32, i32, i32) {
    %c1_i32 = arith.constant 1 : i32
    %0 = arith.muli %arg1, %c1_i32 : i32
    %1 = arith.addi %0, %arg2 : i32
    %c0_i32 = arith.constant 0 : i32
    %c0_i32_0 = arith.constant 0 : i32
    return %arg0, %c0_i32, %1 : i32, i32, i32
  }
  func.func @transform_1(%arg0: i32, %arg1: i32, %arg2: i32) -> (i32, i32, i32) {
    %c1_i32 = arith.constant 1 : i32
    %0 = arith.muli %arg1, %c1_i32 : i32
    %1 = arith.addi %0, %arg2 : i32
    %c0_i32 = arith.constant 0 : i32
    %c0_i32_0 = arith.constant 0 : i32
    return %arg0, %c0_i32, %1 : i32, i32, i32
  }
  func.func @transform_2(%arg0: i32, %arg1: i32, %arg2: i32) -> (i32, i32, i32) {
    %c1_i32 = arith.constant 1 : i32
    %0 = arith.muli %arg0, %c1_i32 : i32
    %1 = arith.addi %0, %arg1 : i32
    %c0_i32 = arith.constant 0 : i32
    %c0_i32_0 = arith.constant 0 : i32
    %c0_i32_1 = arith.constant 0 : i32
    return %1, %c0_i32, %c0_i32_0 : i32, i32, i32
  }
  func.func @transform_3(%arg0: i32, %arg1: i32, %arg2: i32) -> (i32, i32, i32) {
    %c1_i32 = arith.constant 1 : i32
    %0 = arith.muli %arg0, %c1_i32 : i32
    %1 = arith.addi %0, %arg1 : i32
    %c0_i32 = arith.constant 0 : i32
    %c0_i32_0 = arith.constant 0 : i32
    %c0_i32_1 = arith.constant 0 : i32
    return %1, %c0_i32, %c0_i32_0 : i32, i32, i32
  }
}

</mosaic_0001>

<bundles_post_ra>
// kernel: tpu_custom_call.1
= control target key start
LH: loop header
LB: loop body
LE: loop exit
PB: predicated region body
PF: predicated region fallthrough
CT: control target
= control target key end

     0   :  { %9 = vsyncpa [#allocation4], 0  ;;  %s1210_s0 = inlined_call_operand.hbm [shape: f32[2,4,256], index: 0, kind: input, shape index: {}]   ;;  %s1211_s1 = inlined_call_operand.hbm [shape: s32[2,1,256], index: 1, kind: input, shape index: {}]   ;;  %s1212_s2 = inlined_call_operand.hbm [shape: f32[2,1,256], index: 2, kind: output, shape index: {0}]   ;;  %s1213_s3 = inlined_call_operand.hbm [shape: f32[2,1,256], index: 3, kind: output, shape index: {1}]  }
   0x1   :  { %11 = vsyncpa [#allocation4 + $0x1], 0 }
   0x2   :  { %12 = vsyncpa [#allocation7], 0 }
   0x3   :  { %14 = vsyncpa [#allocation7 + $0x1], 0 }
   0x4   :  { %15 = vsyncpa [#allocation5], 0 }
   0x5   :  { %17 = vsyncpa [#allocation5 + $0x1], 0 }
   0x6   :  { %18 = vsyncpa [#allocation10], 0 }
   0x7   :  { %20 = vsyncpa [#allocation10 + $0x1], 0  ;;  %s915_s12 = smov 0   ;;  %s917_s13 = smov 0  }
   0x8   :  { %s919_s14 = smov 0   ;;  %s921_s15 = smov 0  }
   0x9   :  { %s923_s16 = smov 0   ;;  %s925_s17 = smov 0  }
   0xa LB: > { %s596_s18 = sadd.s32 4294967295, %s885_s17   ;;  %s597_s19 = sadd.s32 4294967294, %s885_s17   ;;  %s885_s17 = sphi %s925_s17, %s26_s17   ;;  %s881_s16 = sphi %s923_s16, %s1235_s16   ;;  %s877_s15 = sphi %s921_s15, %s1234_s15   ;;  %s873_s14 = sphi %s919_s14, %s1233_s14   ;;  %s869_s13 = sphi %s917_s13, %s1232_s13   ;;  %s865_s12 = sphi %s915_s12, %s1231_s12  }
   0xb   : > { %s45_s20 = sadd.s32 1, %s881_s16  ;;  %s56_s21 = sadd.s32 1, %s873_s14 }
   0xc   : > { %p47_p0 = scmp.ge.s32.totalorder %s45_s20, 2  ;;  %p63_p1 = scmp.ne.s32.totalorder %s873_s14, %s869_s13 }
   0xd   : > { %p64_p2 = scmp.eq.s32.totalorder %s885_s17, 0  ;;  %p69_p3 = scmp.ne.s32.totalorder %s869_s13, %s865_s12 }
   0xe   : > { %s1237_s20 = smov (%p47_p0, %s45_s20), 0  ;;  %p70_p5 = scmp.eq.s32.totalorder %s596_s18, 0 }
   0xf   : > { %p956_p4 = por %p64_p2, %p63_p1  ;;  %s51_s23 = ssub.s32 %s881_s16, %s1237_s20 }
  0x10   : > { %p125_p6 = scmp.eq.s32.totalorder %s596_s18, 1  ;;  %p54_p7 = scmp.eq.s32.totalorder %s51_s23, 0 }
  0x11   : > { %p962_p8 = por %p70_p5, %p69_p3  ;;  %p131_p10 = scmp.eq.s32.totalorder %s597_s19, 1 }
  0x12   : > { %p966_p9 = por %p125_p6, %p63_p1  ;;  %p646_p13 = scmp.lt.s32.totalorder %s885_s17, 2 }
  0x13   : > { %s1217_s24 = scalar_select %p962_p8, 1, 0 }
  0x14   : > { %s1218_s25 = scalar_select %p966_p9, 1, 0 }
  0x15   : > { %s971_s26 = scalar_select %p54_p7, %s873_s14, %s56_s21  }
  0x16   : > { %p973_p11 = por %p131_p10, %p69_p3  ;;  %s980_s28 = sand.u32 1, %s873_s14  }
  0x17   : > { %s600_s29 = sshll.u32 %s980_s28, 3  ;;  %s620_s30 = sshll.u32 %s881_s16, 7 }
  0x18   : > { %s1219_s27 = scalar_select %p973_p11, 1, 0 }
  0x19   : > { %s987_s6 = scalar_lea.hbm %s1210_s0, %s620_s30  ;;  %s183_s7 = scalar_lea.vmem [#allocation3], %s600_s29 }
  0x1a   : > { %s194_s8 = sshll.u32 %s183_s7, 4  ;;  %p993_p0 = pnand %p646_p13, %p956_p4  ;;  %s989_s8 = int_to_ptr.vmem [resolvable:$true] %s194_s8 }
  0x1b   : > { %s180_s10 = scalar_lea.sflag [#allocation4], %s980_s28  ;;  %s707_s11 = scalar_lea.hbm %s987_s6, 128 }
  0x1c   : > { %p708_p3 = scmp.ne.s32.totalorder %s987_s6, %s707_s11  ;;  %p709_p5 = pneg %p993_p0 }
  0x1d   : > { %s712_s21 = scalar_lea.hbm %s1210_s0, 256  ;;  %p713_p4 = scmp.lt.u32.totalorder %s987_s6, %s1210_s0 }
  0x1e   : > { %p710_p6 = pnand %p709_p5, %p708_p3  ;;  %p714_p10 = scmp.lt.u32.totalorder %s712_s21, %s707_s11 }
  0x1f   : > { %p716_p12 = scmp.lt.u32.totalorder %s707_s11, %s987_s6 }
  0x20   : > { %p711_p7 = pneg %p710_p6  ;;  %p715_p13 = por %p714_p10, %p713_p4 }
  0x22   : > { %p717_p1 = por %p716_p12, %p715_p13 }
  0x24   : > { %p718_p2 = pnand %p717_p1, %p711_p7 }
  0x26   : > { %721 = shalt.err (!%p718_p2)
}
  0x27   : > { %s722_s29 = scalar_lea.vmem %s989_s8, 128  ;;  %s887_s30 = smov [#allocation3]  }
  0x28   : > { %p723_p3 = scmp.ne.s32.totalorder %s989_s8, %s722_s29  ;;  %s727_s4 = sshll.u32 %s887_s30, 4  ;;  %s728_s4 = int_to_ptr.vmem [resolvable:$false] %s727_s4 }
  0x29   : > { %s729_s5 = scalar_lea.vmem %s728_s4, 256  ;;  %p730_p9 = scmp.lt.s32.totalorder %s989_s8, %s728_s4 }
  0x2a   : > { %p725_p6 = pnand %p723_p3, %p709_p5  ;;  %p731_p4 = scmp.lt.s32.totalorder %s729_s5, %s722_s29 }
  0x2c   : > { %p726_p11 = pneg %p725_p6  ;;  %p732_p10 = por %p731_p4, %p730_p9 }
  0x2e   : > { %p733_p12 = pnand %p732_p10, %p726_p11 }
  0x30   : > { %736 = shalt.err (!%p733_p12)
}
  0x31   : > { %635 = dma.hbm_to_vmem [thread:$0]  (!%p993_p0), %s987_s6, 128, %s989_s8, %s180_s10  }
  0x32   : > { %p1221_p1 = scmp.lt.s32.totalorder %s885_s17, 3  ;;  %p1222_p2 = scmp.ge.s32.totalorder %s885_s17, 1 }
  0x33   : > { %s603_s11 = sshll.u32 %s980_s28, 1  ;;  %s621_s18 = sshll.u32 %s881_s16, 5 }
  0x34   : > { %p1029_p7 = pnand %p1222_p2, %p1221_p1  ;;  %s1038_s22 = scalar_lea.hbm %s1211_s1, %s621_s18 }
  0x35   : > { %s205_s23 = scalar_lea.vmem [#allocation6], %s603_s11  ;;  %s202_s6 = scalar_lea.sflag [#allocation7], %s980_s28 }
  0x36   : > { %s1223_s7 = scalar_select %p1029_p7, 1, 0 }
  0x37   : > { %s216_s29 = sshll.u32 %s205_s23, 4  ;;  %s737_s8 = scalar_lea.hbm %s1038_s22, 32  ;;  %s217_s29 = int_to_ptr.vmem [resolvable:$true] %s216_s29 }
  0x38   : > { %p738_p9 = scmp.ne.s32.totalorder %s1038_s22, %s737_s8  ;;  %s742_s4 = scalar_lea.hbm %s1211_s1, 64 }
  0x39   : > { %p743_p3 = scmp.lt.u32.totalorder %s1038_s22, %s1211_s1  ;;  %p744_p6 = scmp.lt.u32.totalorder %s742_s4, %s737_s8 }
  0x3a   : > { %p740_p11 = pnand %p738_p9, %p709_p5  ;;  %p746_p10 = scmp.lt.u32.totalorder %s737_s8, %s1038_s22 }
  0x3b   : > { %p745_p4 = por %p744_p6, %p743_p3 }
  0x3c   : > { %p741_p13 = pneg %p740_p11 }
  0x3d   : > { %p747_p12 = por %p746_p10, %p745_p4 }
  0x3f   : > { %p748_p1 = pnand %p747_p12, %p741_p13 }
  0x41   : > { %751 = shalt.err (!%p748_p1)
}
  0x42   : > { %s752_s28 = scalar_lea.vmem %s217_s29, 32  ;;  %s888_s11 = smov [#allocation6]  }
  0x43   : > { %p753_p2 = scmp.ne.s32.totalorder %s217_s29, %s752_s28  ;;  %s757_s19 = sshll.u32 %s888_s11, 4  ;;  %s758_s19 = int_to_ptr.vmem [resolvable:$false] %s757_s19 }
  0x44   : > { %s759_s21 = scalar_lea.vmem %s758_s19, 64  ;;  %p760_p8 = scmp.lt.s32.totalorder %s217_s29, %s758_s19 }
  0x45   : > { %p755_p9 = pnand %p753_p2, %p709_p5  ;;  %p761_p7 = scmp.lt.s32.totalorder %s759_s21, %s752_s28 }
  0x47   : > { %p756_p11 = pneg %p755_p9  ;;  %p762_p3 = por %p761_p7, %p760_p8 }
  0x49   : > { %p763_p6 = pnand %p762_p3, %p756_p11 }
  0x4b   : > { %766 = shalt.err (!%p763_p6)
}
  0x4c   : > { %638 = dma.hbm_to_vmem [thread:$0]  (!%p993_p0), %s1038_s22, 32, %s217_s29, %s202_s6  }
  0x4d   : > { %p1224_p13 = scmp.ne.s32.totalorder %s1223_s7, 0 }
  0x4e   : > { %s1063_s23 = sand.u32 (!%p1224_p13), 1, %s869_s13   ;;  %p1225_p5 = scmp.ne.s32.totalorder (!%p1224_p13), %s1217_s24, 0 }
  0x4f   : > { %225 = sbr.rel (%p1224_p13) target bundleno = 196 (0xc4), region = 28  ;;  %s607_s8 = sshll.u32 (!%p1224_p13), %s1063_s23, 3 }
  0x50   : > { %s228_s10 = scalar_lea.sflag (!%p1224_p13), [#allocation4], %s1063_s23  ;;  %s231_s30 = scalar_lea.vmem (!%p1224_p13), [#allocation3], %s607_s8 }
  0x56   : > { %848 = dma.done.wait (%p1225_p5), %s228_s10, 128  }
  0x57   : > { %850 = vsyncadd (%p1225_p5), %s228_s10, 4294967168  ;;  %s608_s9 = sshll.u32 %s1063_s23, 1  ;;  %s237_s7 = scalar_lea.sflag [#allocation7], %s1063_s23 }
  0x58   : > { %s240_s22 = scalar_lea.vmem [#allocation6], %s608_s9 }
  0x59   : > { %852 = dma.done.wait (%p1225_p5), %s237_s7, 32  }
  0x5a   : > { %854 = vsyncadd (%p1225_p5), %s237_s7, 4294967264  ;;  %v283_v0 = vlaneseq  ;;  %s1081_s29 = scalar_lea.vmem [#allocation8], %s608_s9  ;;  %v889_v2 = vmov 0.0   ;;  %s272_s6 = scalar_lea.vmem [#allocation9], %s608_s9  ;;  %vm305_vm1 = vcmask 1043456   ;;  %v1088_v3 = vld [vmem:[%s231_s30] sm:$0xff] }
  0x5b   : > { %v1090_v4 = vld [vmem:[%s240_s22] sm:$0x3]  ;;  %v303_v5 = vcombine.high %v1088_v3, %v1088_v3  ;;  %v306_v6 = vsel %vm305_vm1, %v1088_v3, -inf  ;;  %s622_s24 = sshll.u32 %s877_s15, 5  ;;  %s450_s4 = sshll.u32 %s272_s6, 4  ;;  %s1108_s4 = int_to_ptr.vmem [resolvable:$true] %s450_s4 }
  0x5c   : > { %vm1077_vm0 = vcmp.lt.s32.totalorder %v283_v0, 256  ;;  %vm301_vm2 = vcmp.ne.s32.totalorder %v1090_v4, 255  ;;  %v307_v7 = vrot.slane %v306_v6, 4  ;;  %s1106_s28 = scalar_lea.hbm %s1213_s3, %s622_s24  ;;  %v890_v14 = vmov 839922192   ;;  %s420_s11 = scalar_lea.sflag [#allocation10], %s1063_s23 }
  0x5d   : > { %287 = vst.msk [vmem:[%s1081_s29] sm:$0x3] %vm1077_vm0, %v889_v2  ;;  %288 = vst.msk [vmem:[%s272_s6] sm:$0x3] %vm1077_vm0, %v889_v2  ;;  %v611_v8 = vsel %vm301_vm2, 1.0, %v889_v2  ;;  %v313_v9 = vsel %vm305_vm1, %v303_v5, -inf  ;;  %v292_v15 = vunpack.c.l.s4 %v890_v14 }
  0x5e   : > { %v308_v11 = vmax.f32 %v306_v6, %v307_v7  ;;  %v314_v12 = vrot.slane %v313_v9, 4  ;;  %v1110_v16 = vshrl.u32 %v283_v0, 7  ;;  %s767_s19 = scalar_lea.vmem %s1108_s4, 32  ;;  %p1228_p0 = scmp.ne.s32.totalorder %s1218_s25, 0 }
  0x5f   : > { %p768_p8 = scmp.ne.s32.totalorder %s1108_s4, %s767_s19  ;;  %s891_s21 = smov [#allocation9]  }
  0x60   : > { %v309_v17 = vrot.slane %v308_v11, 2  ;;  %v315_v18 = vmax.f32 %v313_v9, %v314_v12  ;;  %s771_s8 = sshll.u32 %s891_s21, 4  ;;  %s772_s8 = int_to_ptr.vmem [resolvable:$false] %s771_s8 }
  0x61   : > { %p769_p7 = pnand %p768_p8, %p1228_p0  ;;  %s773_s10 = scalar_lea.vmem %s772_s8, 64 }
  0x62   : > { %p774_p10 = scmp.lt.s32.totalorder %s1108_s4, %s772_s8  ;;  %p775_p12 = scmp.lt.s32.totalorder %s773_s10, %s767_s19 }
  0x63   : > { %p770_p4 = pneg %p769_p7 }
  0x64   : > { %v409_v10 = vld [vmem:[%s272_s6] sm:$0x3]  ;;  %p776_p1 = por %p775_p12, %p774_p10 }
  0x65   : > { %v412_v13 = vadd.f32 %v611_v8, %v409_v10 }
  0x66   : > { %p777_p2 = pnand %p776_p1, %p770_p4 }
  0x67   : > { %413 = vst.msk [vmem:[%s272_s6] sm:$0x3] %vm1077_vm0, %v412_v13 }
  0x68   : > { %780 = shalt.err (!%p777_p2)
}
  0x69   : > { %s781_s30 = scalar_lea.hbm %s1106_s28, 32  ;;  %s785_s22 = scalar_lea.hbm %s1213_s3, 64 }
  0x6a   : > { %p782_p9 = scmp.ne.s32.totalorder %s1106_s28, %s781_s30  ;;  %p786_p6 = scmp.lt.u32.totalorder %s1106_s28, %s1213_s3 }
  0x6b   : > { %p787_p13 = scmp.lt.u32.totalorder %s785_s22, %s781_s30  ;;  %p789_p8 = scmp.lt.u32.totalorder %s781_s30, %s1106_s28 }
  0x6c   : > { %p783_p11 = pnand %p782_p9, %p1228_p0 }
  0x6d   : > { %p788_p5 = por %p787_p13, %p786_p6 }
  0x6e   : > { %p784_p3 = pneg %p783_p11 }
  0x6f   : > { %p790_p7 = por %p789_p8, %p788_p5 }
  0x71   : > { %p791_p4 = pnand %p790_p7, %p784_p3 }
  0x73   : > { %794 = shalt.err (!%p791_p4)
}
  0x74   : > { %629 = dma.vmem_to_hbm [thread:$0]  (%p1228_p0), %s1108_s4, 32, %s1106_s28, %s420_s11   ;;  %v310_v19 = vmax.f32 %v308_v11, %v309_v17  ;;  %v316_v20 = vrot.slane %v315_v18, 2  ;;  %v293_v21 = vunpack.c.0.s8 %v292_v15  ;;  %v352_v24 = vsub.s32 0, %v1110_v16 }
  0x75   : > { %v356_v25 = vsub.s32 1, %v1110_v16  ;;  %v348_v26 = vsel %vm301_vm2, %v1090_v4, 0  ;;  %v892_v38 = vmov 0.005   ;;  %v893_v8 = vmov 1966171168   ;;  %s1158_s11 = scalar_lea.hbm %s1212_s2, %s622_s24 }
  0x76   : > { %v311_v22 = vrot.slane %v310_v19, 1  ;;  %v317_v23 = vmax.f32 %v315_v18, %v316_v20  ;;  %v296_v29 = vsub.s32 %v293_v21, %v1110_v16  ;;  %v353_v31 = vrot.slane %v348_v26, %v352_v24  ;;  %s435_s4 = sshll.u32 %s1081_s29, 4  ;;  %s415_s19 = scalar_lea.sflag [#allocation5], %s1063_s23  ;;  %s1160_s4 = int_to_ptr.vmem [resolvable:$true] %s435_s4 }
  0x77   : > { %v357_v32 = vrot.slane %v348_v26, %v356_v25  ;;  %v388_v9 = vunpack.c.l.s4 %v893_v8  ;;  %v383_v25 = vld [vmem:[%s1081_s29] sm:$0x3]  ;;  %s795_s21 = scalar_lea.vmem %s1160_s4, 32  ;;  %s894_s15 = smov [#allocation8]  }
  0x78   : > { %v312_v27 = vmax.f32 %v310_v19, %v311_v22  ;;  %v318_v28 = vrot.slane %v317_v23, 1  ;;  %v297_v34 = vrot.slane %v1110_v16, %v296_v29  ;;  %p796_p10 = scmp.ne.s32.totalorder %s1160_s4, %s795_s21  ;;  %s799_s8 = sshll.u32 %s894_s15, 4  ;;  %s800_s8 = int_to_ptr.vmem [resolvable:$false] %s799_s8 }
  0x79   : > { %v358_v36 = vcombine.low %v353_v31, %v357_v32  ;;  %v389_v18 = vunpack.c.0.s8 %v388_v9  ;;  %s801_s10 = scalar_lea.vmem %s800_s8, 64  ;;  %p802_p2 = scmp.lt.s32.totalorder %s1160_s4, %s800_s8 }
  0x7a   : > { %v319_v30 = vmax.f32 %v317_v23, %v318_v28  ;;  %p797_p12 = pnand %p796_p10, %p1228_p0  ;;  %p803_p9 = scmp.lt.s32.totalorder %s801_s10, %s795_s21 }
  0x7b   : > { %vm359_vm3 = vcmp.eq.s32.totalorder %v297_v34, %v358_v36  ;;  %v392_v22 = vsub.s32 %v389_v18, %v1110_v16 }
  0x7c   : > { %v322_v33 = vcombine.low %v312_v27, %v319_v30  ;;  %v360_v39 = vsel %vm359_vm3, 0.9, %v892_v38  ;;  %p798_p1 = pneg %p797_p12  ;;  %p804_p11 = por %p803_p9, %p802_p2 }
  0x7e   : > { %v324_v35 = vsub.f32 %v1088_v3, %v322_v33  ;;  %p805_p3 = pnand %p804_p11, %p798_p1 }
  0x80   : > { %v325_v37 = vmul.f32 1.442695, %v324_v35  ;;  %v361_v40 = vmul.f32 %v360_v39, %v324_v35 }
  0x82   : > { %701 = vpow2.f32 %v325_v37  ;;  %v363_v42 = vcombine.high %v361_v40, %v361_v40  ;;  %v365_v46 = vsel %vm305_vm1, %v361_v40, 0.0 }
  0x83   : > { %v366_v51 = vrot.slane %v365_v46, 4 }
  0x84   : > { %v372_v50 = vsel %vm305_vm1, %v363_v42, 0.0 }
  0x85   : > { %v373_v54 = vrot.slane %v372_v50, 4  ;;  %v367_v57 = vadd.f32 %v366_v51, %v365_v46 }
  0x87   : > { %v374_v60 = vadd.f32 %v373_v54, %v372_v50  ;;  %v368_v63 = vrot.slane %v367_v57, 2 }
  0x89   : > { %v375_v2 = vrot.slane %v374_v60, 2  ;;  %v369_v3 = vadd.f32 %v368_v63, %v367_v57 }
  0x8b   : > { %v376_v5 = vadd.f32 %v375_v2, %v374_v60  ;;  %v370_v6 = vrot.slane %v369_v3, 1 }
  0x8c   : > { %v702_v41 = vpop.eup %701 }
  0x8d   : > { %v328_v43 = vcombine.high %v702_v41, %v702_v41  ;;  %v330_v44 = vsel %vm305_vm1, %v702_v41, 0.0  ;;  %v377_v7 = vrot.slane %v376_v5, 1  ;;  %v371_v12 = vadd.f32 %v370_v6, %v369_v3 }
  0x8e   : > { %v331_v45 = vrot.slane %v330_v44, 4 }
  0x8f   : > { %v337_v47 = vsel %vm305_vm1, %v328_v43, 0.0  ;;  %v378_v15 = vadd.f32 %v377_v7, %v376_v5 }
  0x90   : > { %v332_v48 = vadd.f32 %v331_v45, %v330_v44  ;;  %v338_v49 = vrot.slane %v337_v47, 4 }
  0x92   : > { %v333_v52 = vrot.slane %v332_v48, 2  ;;  %v339_v53 = vadd.f32 %v338_v49, %v337_v47 }
  0x94   : > { %v334_v55 = vadd.f32 %v333_v52, %v332_v48  ;;  %v340_v56 = vrot.slane %v339_v53, 2 }
  0x96   : > { %v335_v58 = vrot.slane %v334_v55, 1  ;;  %v341_v59 = vadd.f32 %v340_v56, %v339_v53 }
  0x98   : > { %v336_v61 = vadd.f32 %v335_v58, %v334_v55  ;;  %v342_v62 = vrot.slane %v341_v59, 1 }
  0x9a   : > { %v343_v0 = vadd.f32 %v342_v62, %v341_v59  ;;  %703 = vlog2.f32 %v336_v61 }
  0x9c   : > { %705 = vlog2.f32 %v343_v0 }
  0xa4   : > { %v704_v10 = vpop.eup %703 }
  0xa5   : > { %v345_v11 = vmul.f32 0.6931472, %v704_v10 }
  0xa6   : > { %v706_v13 = vpop.eup %705 }
  0xa7   : > { %v347_v14 = vmul.f32 0.6931472, %v706_v13  ;;  %v379_v17 = vmul.f32 0.915, %v345_v11 }
  0xa9   : > { %v380_v19 = vmul.f32 0.915, %v347_v14  ;;  %v381_v20 = vsub.f32 %v379_v17, %v371_v12 }
  0xab   : > { %v382_v21 = vsub.f32 %v380_v19, %v378_v15 }
  0xad   : > { %v386_v23 = vcombine.low %v381_v20, %v382_v21 }
  0xaf   : > { %v393_v24 = vrot.slane %v386_v23, %v392_v22 }
  0xb1   : > { %v400_v26 = vrot.slane %v393_v24, %v392_v22 }
  0xb3   : > { %v402_v27 = vsel %vm301_vm2, %v400_v26, 0.0 }
  0xb4   : > { %v403_v28 = vadd.f32 %v402_v27, %v383_v25 }
  0xb6   : > { %408 = vst.msk [vmem:[%s1081_s29] sm:$0x3] %vm1077_vm0, %v403_v28 }
  0xb7   : > { %808 = shalt.err (!%p805_p3)
}
  0xb8   : > { %s809_s23 = scalar_lea.hbm %s1158_s11, 32  ;;  %s813_s30 = scalar_lea.hbm %s1212_s2, 64 }
  0xb9   : > { %p810_p6 = scmp.ne.s32.totalorder %s1158_s11, %s809_s23  ;;  %p814_p8 = scmp.lt.u32.totalorder %s1158_s11, %s1212_s2 }
  0xba   : > { %p815_p7 = scmp.lt.u32.totalorder %s813_s30, %s809_s23  ;;  %p817_p10 = scmp.lt.u32.totalorder %s809_s23, %s1158_s11 }
  0xbb   : > { %p811_p13 = pnand %p810_p6, %p1228_p0 }
  0xbc   : > { %p816_p4 = por %p815_p7, %p814_p8 }
  0xbd   : > { %p812_p5 = pneg %p811_p13 }
  0xbe   : > { %p818_p12 = por %p817_p10, %p816_p4 }
  0xc0   : > { %p819_p1 = pnand %p818_p12, %p812_p5 }
  0xc2   : > { %822 = shalt.err (!%p819_p1)
}
  0xc3   : > { %628 = dma.vmem_to_hbm [thread:$0]  (%p1228_p0), %s1160_s4, 32, %s1158_s11, %s415_s19  }
  0xc4 PF: > { %s462_s22 = sand.u32 1, %s865_s12   ;;  %p1229_p2 = scmp.ne.s32.totalorder %s1219_s27, 0 }
  0xc5   : > { %p1230_p9 = scmp.ge.s32.totalorder %s885_s17, 2  ;;  %s463_s6 = scalar_lea.sflag [#allocation5], %s462_s22 }
  0xc7   : > { %p640_p11 = pnand %p1230_p9, %p1229_p2 }
  0xc9   : > { %856 = dma.done.wait (!%p640_p11), %s463_s6, 32  }
  0xca   : > { %858 = vsyncadd (!%p640_p11), %s463_s6, 4294967264  ;;  %s472_s5 = scalar_lea.sflag [#allocation10], %s462_s22 }
  0xcb   : > { %860 = dma.done.wait (!%p640_p11), %s472_s5, 32  }
  0xcc   : > { %862 = vsyncadd (!%p640_p11), %s472_s5, 4294967264  ;;  %s26_s17 = sadd.s32 1, %s885_s17   ;;  %s1231_s12 = smov %s869_s13 }
  0xcd   : > { %p23_p3 = scmp.ge.s32.totalorder %s26_s17, 4   ;;  %s1232_s13 = smov %s873_s14 }
  0xce   : > { %s1233_s14 = smov %s971_s26  ;;  %s1234_s15 = smov %s881_s16 }
  0xcf   : > { %s1235_s16 = smov %s1237_s20  ;;  %25 = sbr.rel (!%p23_p3) target bundleno = 10 (0xa), region = 107 }
  0xd6   :  { %477 = vsyncpa [#allocation4], 1 }
  0xd7   :  { %479 = vsyncpa [#allocation4 + $0x1], 1 }
  0xd8   :  { %480 = vsyncpa [#allocation7], 1 }
  0xd9   :  { %482 = vsyncpa [#allocation7 + $0x1], 1 }
  0xda   :  { %483 = vsyncpa [#allocation5], 1 }
  0xdb   :  { %485 = vsyncpa [#allocation5 + $0x1], 1 }
  0xdc   :  { %486 = vsyncpa [#allocation10], 1 }
  0xdd   :  { %488 = vsyncpa [#allocation10 + $0x1], 1 }

</bundles_post_ra>
